<compile_context>
chip_gen: v5e
topology: v5e:2x2
jax: 0.10.0
libtpu: 0.0.40
codegen_flags: <defaults>
</compile_context>

<pallas_src>
import functools

import jax
import jax.numpy as jnp
from jax.experimental import pallas as pl
from jax.experimental.pallas import tpu as pltpu


def _round_up(x, m):
    return ((x + m - 1) // m) * m


def _roberta_emb_kernel(ids_ref,                # SMEM (n_pad,) int32 word ids (scalar prefetch)
                        pos_ref, tok_ref,       # VMEM (TM, 1) int32 position / token-type ids
                        wemb_hbm,               # HBM (V, H) f32 word table (pl.ANY)
                        aux_ref,                # VMEM (P_pad+T_pad, H) f32 pos+type table, resident
                        gamma_ref, beta_ref,    # VMEM (1, H) f32, resident
                        out_ref,                # VMEM (TM, H) out_dtype
                        wrows, sems,            # scratch: (2, C, H) f32, DMA sems (2,)
                        *, block_tokens, chunk, pos_rows, eps):
    i = pl.program_id(0)
    tile_base = i * block_tokens
    n_chunks = block_tokens // chunk
    h = out_ref.shape[-1]
    aux_n = aux_ref.shape[0]
    inv_h = 1.0 / h

    def issue(c_idx, buf):
        base = tile_base + c_idx * chunk

        @pl.loop(0, chunk)
        def _(r):
            wid = ids_ref[base + r]
            pltpu.make_async_copy(wemb_hbm.at[wid], wrows.at[buf, r],
                                  sems.at[buf]).start()

    def wait(buf):
        # All `chunk` row copies of this buffer signal the same semaphore; one
        # slab-sized wait (descriptor used only for sizing) covers all of them.
        pltpu.make_async_copy(wrows.at[buf], wrows.at[buf], sems.at[buf]).wait()

    issue(0, 0)
    for c in range(n_chunks):
        if c + 1 < n_chunks:
            issue(c + 1, (c + 1) % 2)          # prefetch next chunk's rows
        buf = c % 2
        sl = pl.ds(c * chunk, chunk)

        # Position + token-type lookup as one two-hot MXU matmul against the
        # small resident table, computed while the word-row DMAs are in flight.
        pos_c = pos_ref[sl, :]                 # (chunk, 1) int32
        tok_c = tok_ref[sl, :] + pos_rows      # shifted into the type rows
        iota = jax.lax.broadcasted_iota(jnp.int32, (chunk, aux_n), 1)
        two_hot = ((iota == pos_c).astype(jnp.float32)
                   + (iota == tok_c).astype(jnp.float32))
        aux = jnp.dot(two_hot, aux_ref[...], preferred_element_type=jnp.float32)

        wait(buf)
        emb = wrows[buf] + aux                 # (chunk, H) f32

        # LayerNorm (centered two-pass variance; biased, like nn.LayerNorm).
        mean = jnp.sum(emb, axis=-1, keepdims=True) * inv_h
        d = emb - mean
        var = jnp.sum(d * d, axis=-1, keepdims=True) * inv_h
        inv = jax.lax.rsqrt(var + eps)
        out_ref[sl, :] = ((d * inv) * gamma_ref[...]
                          + beta_ref[...]).astype(out_ref.dtype)


def create_position_ids_from_input_ids(input_ids, padding_idx,
                                       past_key_values_length=0):
    """JAX port of the fairseq-style position id construction (glue, not hot path)."""
    mask = (input_ids != padding_idx).astype(jnp.int32)
    incremental = (jnp.cumsum(mask, axis=1) + past_key_values_length) * mask
    return incremental + padding_idx


def roberta_embeddings(input_ids, word_emb, pos_emb, type_emb, gamma, beta,
                       *, padding_idx, token_type_ids=None, position_ids=None,
                       past_key_values_length=0, eps=1e-12, block_tokens=256,
                       gather_chunk=64, out_dtype=jnp.float32):
    B, S = input_ids.shape
    V, H = word_emb.shape
    P = pos_emb.shape[0]
    T = type_emb.shape[0]
    assert padding_idx < V and padding_idx < P, "padding_idx must index valid table rows"
    assert block_tokens % 8 == 0 and gather_chunk % 8 == 0

    if position_ids is None:
        position_ids = create_position_ids_from_input_ids(
            input_ids, padding_idx, past_key_values_length)
    if token_type_ids is None:
        token_type_ids = jnp.zeros((B, S), dtype=jnp.int32)

    N = B * S
    # Keep the grid >= 2 steps whenever possible (both v7x TensorCores busy).
    tm = min(block_tokens, max(8, _round_up(-(-N // 2), 8)))
    n_pad = _round_up(N, tm)
    grid = (n_pad // tm,)

    chunk = min(gather_chunk, tm)
    while tm % chunk != 0:
        chunk -= 8

    def flat_pad(x, fill):
        x = x.reshape(N).astype(jnp.int32)
        if n_pad != N:
            x = jnp.pad(x, (0, n_pad - N), constant_values=fill)
        return x

    ids = flat_pad(input_ids, padding_idx)                    # pad rows hit valid table rows
    pos2 = flat_pad(position_ids, padding_idx).reshape(n_pad, 1)
    tok2 = flat_pad(token_type_ids, 0).reshape(n_pad, 1)

    # Small position + token-type tables live in VMEM as one concatenated table.
    p_pad = _round_up(P, 8)
    t_pad = _round_up(T, 8)
    aux_rows = p_pad + t_pad
    aux = jnp.zeros((aux_rows, H), jnp.float32)
    aux = aux.at[:P].set(pos_emb.astype(jnp.float32))
    aux = aux.at[p_pad:p_pad + T].set(type_emb.astype(jnp.float32))

    wemb = word_emb.astype(jnp.float32)
    gamma2 = gamma.reshape(1, H).astype(jnp.float32)
    beta2 = beta.reshape(1, H).astype(jnp.float32)

    kernel = functools.partial(_roberta_emb_kernel, block_tokens=tm,
                               chunk=chunk, pos_rows=p_pad, eps=eps)

    grid_spec = pltpu.PrefetchScalarGridSpec(
        num_scalar_prefetch=1,
        grid=grid,
        in_specs=[
            pl.BlockSpec((tm, 1), lambda i, _: (i, 0)),          # position ids
            pl.BlockSpec((tm, 1), lambda i, _: (i, 0)),          # token-type ids
            pl.BlockSpec(memory_space=pl.ANY),                   # word table (HBM)
            pl.BlockSpec((aux_rows, H), lambda i, _: (0, 0)),    # pos+type table (resident)
            pl.BlockSpec((1, H), lambda i, _: (0, 0)),           # gamma
            pl.BlockSpec((1, H), lambda i, _: (0, 0)),           # beta
        ],
        out_specs=pl.BlockSpec((tm, H), lambda i, _: (i, 0)),
        scratch_shapes=[
            pltpu.VMEM((2, chunk, H), jnp.float32),   # double-buffered word rows
            pltpu.SemaphoreType.DMA((2,)),            # one shared sem per buffer
        ],
    )

    out_isz = jnp.dtype(out_dtype).itemsize
    vmem_est = (2 * tm * H * out_isz          # double-buffered output block
                + 2 * aux_rows * H * 4        # resident pos+type table
                + 4 * H * 4                   # gamma + beta
                + 4 * tm * 4                  # id blocks
                + 2 * chunk * H * 4)          # gather scratch
    vmem_limit = min(64 * 1024 * 1024, max(32 * 1024 * 1024, 2 * vmem_est))

    cost = pl.CostEstimate(
        flops=2 * n_pad * aux_rows * H + 10 * n_pad * H,
        transcendentals=n_pad,
        bytes_accessed=(n_pad * H * 4            # word-row gathers
                        + n_pad * H * out_isz    # output writeback
                        + aux_rows * H * 4 + 3 * n_pad * 4),
    )

    out = pl.pallas_call(
        kernel,
        grid_spec=grid_spec,
        out_shape=jax.ShapeDtypeStruct((n_pad, H), out_dtype),
        compiler_params=pltpu.CompilerParams(
            dimension_semantics=("parallel",),
            vmem_limit_bytes=vmem_limit),
        cost_estimate=cost,
    )(ids, pos2, tok2, wemb, aux, gamma2, beta2)

    return out[:N].reshape(B, S, H)


def _reference(input_ids, word_emb, pos_emb, type_emb, gamma, beta,
               *, padding_idx, eps=1e-12):
    """Pure-JAX reference of the PyTorch forward (eval mode)."""
    position_ids = create_position_ids_from_input_ids(input_ids, padding_idx)
    token_type_ids = jnp.zeros_like(input_ids)
    emb = word_emb[input_ids] + type_emb[token_type_ids] + pos_emb[position_ids]
    mean = jnp.mean(emb, axis=-1, keepdims=True)
    var = jnp.mean((emb - mean) ** 2, axis=-1, keepdims=True)
    return (emb - mean) * jax.lax.rsqrt(var + eps) * gamma + beta


if __name__ == "__main__":
    # Small synthetic "config" (H multiple of 128 for lane-dense stores).
    vocab_size = 64
    hidden_size = 128
    max_position_embeddings = 64
    type_vocab_size = 2
    pad_token_id = 1
    layer_norm_eps = 1e-12
    B, S = 2, 13            # N = 26 -> multi-tile grid + padded-tail path

    key = jax.random.PRNGKey(0)
    k_w, k_p, k_t, k_ids = jax.random.split(key, 4)

    word_emb = 0.02 * jax.random.normal(k_w, (vocab_size, hidden_size), jnp.float32)
    word_emb = word_emb.at[pad_token_id].set(0.0)
    pos_emb = 0.02 * jax.random.normal(k_p, (max_position_embeddings, hidden_size), jnp.float32)
    pos_emb = pos_emb.at[pad_token_id].set(0.0)
    type_emb = 0.02 * jax.random.normal(k_t, (type_vocab_size, hidden_size), jnp.float32)
    gamma = jnp.ones((hidden_size,), jnp.float32)   # LayerNorm.weight
    beta = jnp.zeros((hidden_size,), jnp.float32)   # LayerNorm.bias

    input_ids = jax.random.randint(k_ids, (B, S), 2, vocab_size, dtype=jnp.int32)
    input_ids = input_ids.at[1, -2:].set(pad_token_id)

    ref = _reference(input_ids, word_emb, pos_emb, type_emb, gamma, beta,
                     padding_idx=pad_token_id, eps=layer_norm_eps)

    # 1) Default: f32 output (matches the PyTorch module dtype).
    out = roberta_embeddings(
        input_ids, word_emb, pos_emb, type_emb, gamma, beta,
        padding_idx=pad_token_id, eps=layer_norm_eps)
    out = jax.block_until_ready(out)
    assert out.shape == (B, S, hidden_size)
    assert jnp.allclose(out, ref, atol=1e-4, rtol=1e-4), float(jnp.max(jnp.abs(out - ref)))

    # 2) bf16 output + small gather chunks (exercises the chunked DMA pipeline).
    out_bf16 = roberta_embeddings(
        input_ids, word_emb, pos_emb, type_emb, gamma, beta,
        padding_idx=pad_token_id, eps=layer_norm_eps,
        gather_chunk=8, out_dtype=jnp.bfloat16)
    out_bf16 = jax.block_until_ready(out_bf16)
    err = float(jnp.max(jnp.abs(out_bf16.astype(jnp.float32) - ref)))
    assert jnp.allclose(out_bf16.astype(jnp.float32), ref, atol=5e-2, rtol=5e-2), err

    # TODO(synk): dropout is training-mode only; eval forward is identity, so it is omitted.
    print("KERNEL_OK")
</pallas_src>

<mosaic_0001>
module attributes {stable_mosaic.version = 11 : i64} {
  func.func @_roberta_emb_kernel(%arg0: i32, %arg1: memref<32xi32, #tpu.memory_space<smem>>, %arg2: memref<16x1xi32, #tpu.memory_space<vmem>>, %arg3: memref<16x1xi32, #tpu.memory_space<vmem>>, %arg4: memref<64x128xf32, #tpu.memory_space<any>>, %arg5: memref<72x128xf32, #tpu.memory_space<vmem>>, %arg6: memref<1x128xf32, #tpu.memory_space<vmem>>, %arg7: memref<1x128xf32, #tpu.memory_space<vmem>>, %arg8: memref<16x128xf32, #tpu.memory_space<vmem>>, %arg9: memref<2x16x128xf32, #tpu.memory_space<vmem>>, %arg10: memref<2x!tpu.dma_semaphore, #tpu.memory_space<semaphore_mem>>) attributes {dimension_semantics = [#tpu.dimension_semantics<parallel>], iteration_bounds = array<i64: 2>, scalar_prefetch = 1 : i64, scratch_operands = 2 : i64, tpu.core_type = #tpu.core_type<tc>, window_params = [{transform_indices = @transform_0, window_bounds = array<i64: 16, 1>}, {transform_indices = @transform_1, window_bounds = array<i64: 16, 1>}, {}, {pipeline_mode = #tpu.pipeline_mode<synchronous>, transform_indices = @transform_3, window_bounds = array<i64: 72, 128>}, {pipeline_mode = #tpu.pipeline_mode<synchronous>, transform_indices = @transform_4, window_bounds = array<i64: 1, 128>}, {pipeline_mode = #tpu.pipeline_mode<synchronous>, transform_indices = @transform_5, window_bounds = array<i64: 1, 128>}, {transform_indices = @transform_6, window_bounds = array<i64: 16, 128>}]} {
    %c16_i32 = arith.constant 16 : i32
    %0 = arith.muli %arg0, %c16_i32 : i32
    %c0_i32 = arith.constant 0 : i32
    %1 = arith.addi %0, %c0_i32 : i32
    %c0_i32_0 = arith.constant 0 : i32
    %c16_i32_1 = arith.constant 16 : i32
    %2 = arith.addi %c0_i32_0, %c16_i32_1 : i32
    %c1_i32 = arith.constant 1 : i32
    scf.for %arg11 = %c0_i32_0 to %2 step %c1_i32  : i32 {
      %c1_i32_29 = arith.constant 1 : i32
      %51 = arith.muli %arg11, %c1_i32_29 : i32
      %c0_i32_30 = arith.constant 0 : i32
      %52 = arith.addi %c0_i32_30, %51 : i32
      %53 = arith.addi %1, %52 : i32
      %54 = arith.index_cast %53 : i32 to index
      %55 = memref.load %arg1[%54] : memref<32xi32, #tpu.memory_space<smem>>
      %c0_i32_31 = arith.constant 0 : i32
      %c0_i32_32 = arith.constant 0 : i32
      %c0_i32_33 = arith.constant 0 : i32
      %56 = tpu.memref_slice %arg4[%55, %c0_i32_33] : memref<64x128xf32, #tpu.memory_space<any>> -> memref<1x128xf32, #tpu.memory_space<any>>
      %57 = tpu.memref_squeeze %56 : memref<1x128xf32, #tpu.memory_space<any>> -> memref<128xf32, #tpu.memory_space<any>>
      %c0_i32_34 = arith.constant 0 : i32
      %58 = tpu.memref_slice %arg9[%c0_i32_31, %52, %c0_i32_34] : memref<2x16x128xf32, #tpu.memory_space<vmem>> -> memref<1x1x128xf32, #tpu.memory_space<vmem>>
      %59 = tpu.memref_squeeze %58 : memref<1x1x128xf32, #tpu.memory_space<vmem>> -> memref<128xf32, #tpu.memory_space<vmem>>
      %60 = tpu.memref_slice %arg10[%c0_i32_32] : memref<2x!tpu.dma_semaphore, #tpu.memory_space<semaphore_mem>> -> memref<1x!tpu.dma_semaphore, #tpu.memory_space<semaphore_mem>>
      %61 = tpu.memref_squeeze %60 : memref<1x!tpu.dma_semaphore, #tpu.memory_space<semaphore_mem>> -> memref<!tpu.dma_semaphore, #tpu.memory_space<semaphore_mem>>
      tpu.enqueue_dma source(%57 : memref<128xf32, #tpu.memory_space<any>>) target(%59 : memref<128xf32, #tpu.memory_space<vmem>>) target_semaphore(%61 : memref<!tpu.dma_semaphore, #tpu.memory_space<semaphore_mem>>)
    }
    %c16_i32_2 = arith.constant 16 : i32
    %c0 = arith.constant 0 : index
    %c0_3 = arith.constant 0 : index
    %3 = vector.load %arg2[%c0, %c0_3] : memref<16x1xi32, #tpu.memory_space<vmem>>, vector<16x1xi32>
    %c0_4 = arith.constant 0 : index
    %c0_5 = arith.constant 0 : index
    %4 = vector.load %arg3[%c0_4, %c0_5] : memref<16x1xi32, #tpu.memory_space<vmem>>, vector<16x1xi32>
    %c64_i32 = arith.constant 64 : i32
    %5 = vector.broadcast %c64_i32 : i32 to vector<16x1xi32>
    %6 = arith.addi %4, %5 : vector<16x1xi32>
    %7 = tpu.iota {dimensions = array<i32: 1>} : vector<16x72xi32>
    %8 = vector.broadcast %3 : vector<16x1xi32> to vector<16x72xi32>
    %9 = arith.cmpi eq, %7, %8 : vector<16x72xi32>
    %10 = arith.extui %9 : vector<16x72xi1> to vector<16x72xi32>
    %11 = arith.sitofp %10 : vector<16x72xi32> to vector<16x72xf32>
    %12 = vector.broadcast %6 : vector<16x1xi32> to vector<16x72xi32>
    %13 = arith.cmpi eq, %7, %12 : vector<16x72xi32>
    %14 = arith.extui %13 : vector<16x72xi1> to vector<16x72xi32>
    %15 = arith.sitofp %14 : vector<16x72xi32> to vector<16x72xf32>
    %16 = arith.addf %11, %15 : vector<16x72xf32>
    %c0_6 = arith.constant 0 : index
    %c0_7 = arith.constant 0 : index
    %17 = vector.load %arg5[%c0_6, %c0_7] : memref<72x128xf32, #tpu.memory_space<vmem>>, vector<72x128xf32>
    %cst = arith.constant dense<0.000000e+00> : vector<16x128xf32>
    %18 = tpu.matmul %16, %17, %cst {dimension_numbers = #tpu.dot_dimension_numbers<[1], [0], [0], [1], [0, 0, 1, 1], [], []>} : vector<16x72xf32>, vector<72x128xf32>, vector<16x128xf32> -> vector<16x128xf32>
    %c0_i32_8 = arith.constant 0 : i32
    %c0_i32_9 = arith.constant 0 : i32
    %c0_i32_10 = arith.constant 0 : i32
    %c0_i32_11 = arith.constant 0 : i32
    %c0_i32_12 = arith.constant 0 : i32
    %19 = tpu.memref_slice %arg9[%c0_i32_8, %c0_i32_11, %c0_i32_12] : memref<2x16x128xf32, #tpu.memory_space<vmem>> -> memref<1x16x128xf32, #tpu.memory_space<vmem>>
    %20 = tpu.memref_squeeze %19 : memref<1x16x128xf32, #tpu.memory_space<vmem>> -> memref<16x128xf32, #tpu.memory_space<vmem>>
    %c0_i32_13 = arith.constant 0 : i32
    %c0_i32_14 = arith.constant 0 : i32
    %21 = tpu.memref_slice %arg9[%c0_i32_9, %c0_i32_13, %c0_i32_14] : memref<2x16x128xf32, #tpu.memory_space<vmem>> -> memref<1x16x128xf32, #tpu.memory_space<vmem>>
    %22 = tpu.memref_squeeze %21 : memref<1x16x128xf32, #tpu.memory_space<vmem>> -> memref<16x128xf32, #tpu.memory_space<vmem>>
    %23 = tpu.memref_slice %arg10[%c0_i32_10] : memref<2x!tpu.dma_semaphore, #tpu.memory_space<semaphore_mem>> -> memref<1x!tpu.dma_semaphore, #tpu.memory_space<semaphore_mem>>
    %24 = tpu.memref_squeeze %23 : memref<1x!tpu.dma_semaphore, #tpu.memory_space<semaphore_mem>> -> memref<!tpu.dma_semaphore, #tpu.memory_space<semaphore_mem>>
    tpu.wait_dma2 semaphore(%24 : memref<!tpu.dma_semaphore, #tpu.memory_space<semaphore_mem>>) src(%20 : memref<16x128xf32, #tpu.memory_space<vmem>>) dst(%22 : memref<16x128xf32, #tpu.memory_space<vmem>>)
    %c0_15 = arith.constant 0 : index
    %c0_16 = arith.constant 0 : index
    %c0_17 = arith.constant 0 : index
    %25 = vector.load %arg9[%c0_15, %c0_16, %c0_17] : memref<2x16x128xf32, #tpu.memory_space<vmem>>, vector<1x16x128xf32>
    %26 = vector.shape_cast %25 : vector<1x16x128xf32> to vector<16x128xf32>
    %27 = arith.addf %26, %18 : vector<16x128xf32>
    %cst_18 = arith.constant dense<0.000000e+00> : vector<16xf32>
    %28 = vector.multi_reduction <add>, %27, %cst_18 [1] : vector<16x128xf32> to vector<16xf32>
    %29 = vector.shape_cast %28 : vector<16xf32> to vector<16x1xf32>
    %cst_19 = arith.constant 7.812500e-03 : f32
    %30 = vector.broadcast %cst_19 : f32 to vector<16x1xf32>
    %31 = arith.mulf %29, %30 : vector<16x1xf32>
    %32 = vector.broadcast %31 : vector<16x1xf32> to vector<16x128xf32>
    %33 = arith.subf %27, %32 : vector<16x128xf32>
    %34 = arith.mulf %33, %33 : vector<16x128xf32>
    %cst_20 = arith.constant dense<0.000000e+00> : vector<16xf32>
    %35 = vector.multi_reduction <add>, %34, %cst_20 [1] : vector<16x128xf32> to vector<16xf32>
    %36 = vector.shape_cast %35 : vector<16xf32> to vector<16x1xf32>
    %cst_21 = arith.constant 7.812500e-03 : f32
    %37 = vector.broadcast %cst_21 : f32 to vector<16x1xf32>
    %38 = arith.mulf %36, %37 : vector<16x1xf32>
    %cst_22 = arith.constant 9.99999996E-13 : f32
    %39 = vector.broadcast %cst_22 : f32 to vector<16x1xf32>
    %40 = arith.addf %38, %39 : vector<16x1xf32>
    %41 = math.rsqrt %40 : vector<16x1xf32>
    %42 = vector.broadcast %41 : vector<16x1xf32> to vector<16x128xf32>
    %43 = arith.mulf %33, %42 : vector<16x128xf32>
    %c0_23 = arith.constant 0 : index
    %c0_24 = arith.constant 0 : index
    %44 = vector.load %arg6[%c0_23, %c0_24] : memref<1x128xf32, #tpu.memory_space<vmem>>, vector<1x128xf32>
    %45 = vector.broadcast %44 : vector<1x128xf32> to vector<16x128xf32>
    %46 = arith.mulf %43, %45 : vector<16x128xf32>
    %c0_25 = arith.constant 0 : index
    %c0_26 = arith.constant 0 : index
    %47 = vector.load %arg7[%c0_25, %c0_26] : memref<1x128xf32, #tpu.memory_space<vmem>>, vector<1x128xf32>
    %48 = vector.broadcast %47 : vector<1x128xf32> to vector<16x128xf32>
    %49 = arith.addf %46, %48 : vector<16x128xf32>
    %c0_27 = arith.constant 0 : index
    %c0_28 = arith.constant 0 : index
    %50 = vector.load %arg8[%c0_27, %c0_28] : memref<16x128xf32, #tpu.memory_space<vmem>>, vector<16x128xf32>
    tpu.vector_store %arg8[%c0_27, %c0_28], %49 {strides = array<i32>} : memref<16x128xf32, #tpu.memory_space<vmem>>, vector<16x128xf32>,
    return
  }
  func.func @transform_0(%arg0: i32, %arg1: memref<32xi32, #tpu.memory_space<smem>>) -> (i32, i32) {
    %c0_i32 = arith.constant 0 : i32
    %c0_i32_0 = arith.constant 0 : i32
    return %arg0, %c0_i32 : i32, i32
  }
  func.func @transform_1(%arg0: i32, %arg1: memref<32xi32, #tpu.memory_space<smem>>) -> (i32, i32) {
    %c0_i32 = arith.constant 0 : i32
    %c0_i32_0 = arith.constant 0 : i32
    return %arg0, %c0_i32 : i32, i32
  }
  func.func @transform_3(%arg0: i32, %arg1: memref<32xi32, #tpu.memory_space<smem>>) -> (i32, i32) {
    %c0_i32 = arith.constant 0 : i32
    %c0_i32_0 = arith.constant 0 : i32
    %c0_i32_1 = arith.constant 0 : i32
    return %c0_i32, %c0_i32_0 : i32, i32
  }
  func.func @transform_4(%arg0: i32, %arg1: memref<32xi32, #tpu.memory_space<smem>>) -> (i32, i32) {
    %c0_i32 = arith.constant 0 : i32
    %c0_i32_0 = arith.constant 0 : i32
    %c0_i32_1 = arith.constant 0 : i32
    return %c0_i32, %c0_i32_0 : i32, i32
  }
  func.func @transform_5(%arg0: i32, %arg1: memref<32xi32, #tpu.memory_space<smem>>) -> (i32, i32) {
    %c0_i32 = arith.constant 0 : i32
    %c0_i32_0 = arith.constant 0 : i32
    %c0_i32_1 = arith.constant 0 : i32
    return %c0_i32, %c0_i32_0 : i32, i32
  }
  func.func @transform_6(%arg0: i32, %arg1: memref<32xi32, #tpu.memory_space<smem>>) -> (i32, i32) {
    %c0_i32 = arith.constant 0 : i32
    %c0_i32_0 = arith.constant 0 : i32
    return %arg0, %c0_i32 : i32, i32
  }
}

</mosaic_0001>

<bundles_post_ra>
// kernel: tpu_custom_call.1
= control target key start
LH: loop header
LB: loop body
LE: loop exit
PB: predicated region body
PF: predicated region fallthrough
CT: control target
= control target key end

     0   :  { %s810_s27 = smov [#allocation5]   ;;  %s984_s0 = inlined_call_operand.vmem [shape: s32[32], index: 0, kind: input, shape index: {}]   ;;  %s985_s1 = inlined_call_operand.vmem [shape: s32[32,1], index: 1, kind: input, shape index: {}]   ;;  %s986_s2 = inlined_call_operand.vmem [shape: s32[32,1], index: 2, kind: input, shape index: {}]   ;;  %s987_s3 = inlined_call_operand.vmem [shape: f32[64,128], index: 3, kind: input, shape index: {}]   ;;  %s988_s4 = inlined_call_operand.hbm [shape: f32[72,128], index: 4, kind: input, shape index: {}]   ;;  %s989_s5 = inlined_call_operand.vmem [shape: f32[1,128], index: 5, kind: input, shape index: {}]   ;;  %s990_s6 = inlined_call_operand.vmem [shape: f32[1,128], index: 6, kind: input, shape index: {}]   ;;  %s991_s7 = inlined_call_operand.hbm [shape: f32[32,128], index: 7, kind: output, shape index: {}]  }
   0x1   :  { %s13_s26 = sshll.u32 %s984_s0, 4  ;;  %s14_s26 = int_to_ptr.vmem [resolvable:$true] %s13_s26 }
   0x2   :  { %16 = dma.vmem_to_smem %s14_s26, 16, %s810_s27, [#allocation4] }
   0x3   :  { %778 = dma.done.wait [#allocation4], 16 }
   0x4   :  { %779 = vsyncadd [#allocation4], 4294967280 }
   0x5   :  { %19 = sfence }
   0x6   :  { %20 = vsyncpa [#allocation7], 0 }
   0x7   :  { %21 = vsyncpa [#allocation8], 0 }
   0x8   :  { %23 = vsyncpa [#allocation8 + $0x1], 0  ;;  %s861_s28 = smov 0   ;;  %s863_s29 = smov 0  }
   0x9   :  { %s865_s30 = smov 0   ;;  %s867_s8 = smov 0  }
   0xa LB: > { %s882_s0 = sadd.s32 4294967295, %s804_s8   ;;  %s580_s9 = sadd.s32 4294967294, %s804_s8   ;;  %s804_s8 = sphi %s867_s8, %s999_s8   ;;  %s800_s30 = sphi %s865_s30, %s998_s30   ;;  %s796_s29 = sphi %s863_s29, %s997_s29   ;;  %s792_s28 = sphi %s861_s28, %s996_s28  }
   0xb   : > { %s886_s10 = sadd.s32 1, %s804_s8   ;;  %s151_s11 = sadd.s32 1, %s800_s30 }
   0xc   : > { %s148_s12 = ssub.s32 %s804_s8, %s886_s10  ;;  %p161_p0 = scmp.ne.s32.totalorder %s800_s30, %s796_s29 }
   0xd   : > { %p149_p1 = scmp.eq.s32.totalorder %s148_s12, 0  ;;  %p162_p2 = scmp.eq.s32.totalorder %s882_s0, 1 }
   0xe   : > { %p167_p3 = scmp.ne.s32.totalorder %s796_s29, %s792_s28  ;;  %p168_p4 = scmp.eq.s32.totalorder %s580_s9, 1 }
   0xf   : > { %s897_s13 = scalar_select %p149_p1, %s800_s30, %s151_s11  }
  0x10   : > { %p899_p5 = por %p162_p2, %p161_p0  ;;  %p903_p6 = por %p168_p4, %p167_p3 }
  0x11   : > { %p581_p7 = scmp.ge.s32.totalorder %s804_s8, 1  ;;  %p175_p8 = scmp.lt.s32.totalorder %s804_s8, 3 }
  0x12   : > { %p629_p9 = scmp.eq.s32.totalorder %s882_s0, 0  ;;  %s186_s18 = sshll.u32 %s988_s4, 4  ;;  %s187_s18 = int_to_ptr.hbm [resolvable:$true] %s186_s18 }
  0x13   : > { %p176_p10 = pnand %p581_p7, %p175_p8  ;;  %s811_s19 = smov [#allocation6]  }
  0x14   : > { %s188_s20 = sshll.u32 %s811_s19, 4  ;;  %s812_s21 = smov 128   ;;  %s189_s20 = int_to_ptr.vmem [resolvable:$true] %s188_s20 }
  0x15   : > { %p621_p11 = pneg %p176_p10  ;;  %s813_s22 = smov 8  }
  0x16   : > { %228 = sbr.rel (%p176_p10) target bundleno = 585 (0x249), region = 40 }
  0x17   : > { %p622_p12 = pnand %p629_p9, %p621_p11 }
  0x19   : > { %624 = dma.hbm_to_vmem [thread:$0]  (!%p622_p12), %s187_s18, 1152, %s189_s20, [#allocation7], %s812_s21, %s812_s21, %s813_s22  }
  0x1b   : > { %781 = dma.done.wait (%p629_p9), [#allocation7], 1152  }
  0x1c   : > { %783 = vsyncadd (%p629_p9), [#allocation7], 4294966144  ;;  %s992_s23 = sand.u32 1, %s796_s29   ;;  %s587_s24 = sshll.u32 %s882_s0, 1 }
  0x1d   : > { %s586_s25 = sshll.u32 %s992_s23, 4  ;;  %p263_p13 = scmp.lt.s32.totalorder %s587_s24, 3 }
  0x1e   : > { %s591_s26 = sshll.u32 %s882_s0, 4  ;;  %s932_s19 = scalar_lea.vmem [#allocation9], %s586_s25 }
  0x1f   : > { %s1001_s24 = smov (!%p263_p13, %s587_s24), 3  ;;  %s806_s20 = smov 0  }
  0x20   : > { %s588_s27 = sshll.u32 %s1001_s24, 3 }
  0x21   : > { %s927_s12 = scalar_lea.vmem %s985_s1, %s588_s27  ;;  %s272_s18 = scalar_lea.vmem %s986_s2, %s588_s27 }
  0x22 LB: >> { %s282_s21 = sadd.s32 %s808_s20, %s591_s26  ;;  %s285_s11 = scalar_lea.vmem [#allocation2], %s808_s20  ;;  %s808_s20 = sphi %s806_s20, %s281_s20  }
  0x23   : >> { %s283_s22 = sld [smem:[#allocation5 + %s282_s21]] }
  0x29   : >> { %s284_s9 = scalar_lea.vmem %s987_s3, %s283_s22 }
  0x2a   : >> { %v300_v0 = vld [vmem:[%s284_s9] sm:$0x1] }
  0x2b   : >> { %301 = vst [vmem:[%s285_s11] sm:$0x1] %v300_v0 }
  0x2c   : >> { %319 = vsyncadd [#allocation3], 16  ;;  %s281_s20 = sadd.s32 1, %s808_s20  }
  0x2d   : >> { %p278_p0 = scmp.ge.s32.totalorder %s281_s20, 16  }
  0x2e   : > { %v320_v1 = vld [vmem:[%s927_s12] sm:$0xff] (%p278_p0)  ;;  %v814_v3 = vmov (%p278_p0), 0   ;;  %v361_v6 = vld [vmem:[#allocation6 + $0x38] sm:$0xff] (%p278_p0)  ;;  %v360_v7 = vld [vmem:[#allocation6 + $0x30] sm:$0xff] (%p278_p0)  ;;  %v326_v17 = vlaneseq (%p278_p0)  ;;  %v815_v21 = vmov (%p278_p0), 0.0   ;;  %vm363_vm2 = vcmask (%p278_p0), 588800  }
  0x2f   : > { %280 = sbr.rel (!%p278_p0) target bundleno = 34 (0x22), region = 127  ;;  %v322_v2 = vld [vmem:[%s272_s18] sm:$0xff] (%p278_p0)  ;;  %680 = vset.pattern.permute.xlu0 (%p278_p0), %v814_v3  ;;  %681 = vset.pattern.permute.xlu1 (%p278_p0), %v814_v3  ;;  %v323_v8 = vld [vmem:[%s272_s18 + $0x8] sm:$0xff] (%p278_p0)  ;;  %v357_v13 = vld [vmem:[#allocation6 + $0x18] sm:$0xff] (%p278_p0) }
  0x30   : > { %v324_v4 = vadd.s32 (%p278_p0), 64, %v322_v2  ;;  %v362_v5 = vld [vmem:[#allocation6 + $0x40] sm:$0xff] (%p278_p0)  ;;  %329 = vperm.xlu0 (%p278_p0), %680, %v320_v1   ;;  %v359_v9 = vld [vmem:[#allocation6 + $0x28] sm:$0xff] (%p278_p0)  ;;  %v325_v11 = vadd.s32 (%p278_p0), 64, %v323_v8  ;;  %v356_v14 = vld [vmem:[#allocation6 + $0x10] sm:$0xff] (%p278_p0)  ;;  %v327_v18 = vand.u32 (%p278_p0), 127, %v326_v17 }
  0x31   : > { %377 = vmatpush.msra.mxu0 (%p278_p0), %v362_v5  ;;  %606 = vmatpush.msra.mxu1 (%p278_p0), %v362_v5  ;;  %v321_v10 = vld [vmem:[%s927_s12 + $0x8] sm:$0xff] (%p278_p0)  ;;  %v358_v12 = vld [vmem:[#allocation6 + $0x20] sm:$0xff] (%p278_p0) }
  0x32   : > { %341 = vperm.xlu1 (%p278_p0), %681, %v324_v4   ;;  %v355_v15 = vld [vmem:[#allocation6 + $0x8] sm:$0xff] (%p278_p0)  ;;  %v354_v16 = vld [vmem:[#allocation6] sm:$0xff] (%p278_p0) }
  0x33   : > { %378 = vmatpush.msra.mxu0 (%p278_p0), %v361_v6  ;;  %607 = vmatpush.msra.mxu1 (%p278_p0), %v361_v6 }
  0x35   : > { %379 = vmatpush.msra.mxu0 %v360_v7  ;;  %608 = vmatpush.msra.mxu1 %v360_v7 }
  0x37   : > { %380 = vmatpush.msra.mxu0 %v359_v9  ;;  %609 = vmatpush.msra.mxu1 %v359_v9 }
  0x38   : > { %332 = vperm.xlu0 %680, %v321_v10  }
  0x39   : > { %381 = vmatpush.msra.mxu0 %v358_v12  ;;  %610 = vmatpush.msra.mxu1 %v358_v12 }
  0x3a   : > { %344 = vperm.xlu1 %681, %v325_v11  }
  0x3b   : > { %382 = vmatpush.msra.mxu0 %v357_v13  ;;  %611 = vmatpush.msra.mxu1 %v357_v13 }
  0x3d   : > { %383 = vmatpush.msra.mxu0 %v356_v14  ;;  %612 = vmatpush.msra.mxu1 %v356_v14 }
  0x3f   : > { %384 = vmatpush.msra.mxu0 %v355_v15  ;;  %613 = vmatpush.msra.mxu1 %v355_v15 }
  0x41   : > { %385 = vmatpush.msra.mxu0 %v354_v16  ;;  %614 = vmatpush.msra.mxu1 %v354_v16 }
  0xa2   : > { %v330_v19 = vpop.permute.xlu0 %329 }
  0xa3   : > { %vm334_vm0 = vcmp.eq.s32.totalorder %v327_v18, %v330_v19 }
  0xa4   : > { %v342_v20 = vpop.permute.xlu1 %341  ;;  %v592_v22 = vsel %vm334_vm0, 1.0, %v815_v21 }
  0xa5   : > { %vm346_vm1 = vcmp.eq.s32.totalorder %v327_v18, %v342_v20 }
  0xa6   : > { %v594_v23 = vsel %vm346_vm1, 1.0, %v815_v21 }
  0xa7   : > { %v352_v24 = vadd.f32 %v594_v23, %v592_v22 }
  0xa9   : > { %596 = vmatmul.msk.f32.vlgmr.msra.gmra.mxu0 %vm363_vm2, %v352_v24 }
  0xaa   : > { %v333_v25 = vpop.permute.xlu0 %332 }
  0xab   : > { %vm335_vm3 = vcmp.eq.s32.totalorder %v327_v18, %v333_v25 }
  0xac   : > { %v345_v26 = vpop.permute.xlu1 %344  ;;  %v593_v27 = vsel %vm335_vm3, 1.0, %v815_v21 }
  0xad   : > { %vm347_vm4 = vcmp.eq.s32.totalorder %v327_v18, %v345_v26 }
  0xae   : > { %v595_v28 = vsel %vm347_vm4, 1.0, %v815_v21 }
  0xaf   : > { %v353_v29 = vadd.f32 %v595_v28, %v593_v27 }
  0xb1   : > { %597 = vmatmul.msk.f32.vlgmr.msra.gmra.mxu1 %vm363_vm2, %v353_v29 }
 0x126   : > { %v387_v30 = vpop.f32.mrf.mxu0 }
 0x12e   : > { %v390_v31 = vpop.f32.mrf.mxu1 }
 0x12f   : > { %784 = dma.done.wait [#allocation3], 256 }
 0x130   : > { %785 = vsyncadd [#allocation3], 4294967040  ;;  %v396_v32 = vld [vmem:[#allocation2] sm:$0xff]  ;;  %v397_v34 = vld [vmem:[#allocation2 + $0x8] sm:$0xff]  ;;  %s466_s18 = scalar_lea.hbm %s991_s7, %s591_s26  ;;  %s467_s20 = sshll.u32 %s932_s19, 4  ;;  %s468_s20 = int_to_ptr.vmem [resolvable:$true] %s467_s20 }
 0x131   : > { %v398_v33 = vadd.f32 %v396_v32, %v387_v30  ;;  %v399_v35 = vadd.f32 %v397_v34, %v390_v31  ;;  %v682_v58 = vld [vmem:[%s989_s5] ss:$0 sm:$0xff]  ;;  %s469_s21 = sshll.u32 %s466_s18, 4  ;;  %s995_s22 = sand.u32 1, %s796_s29   ;;  %s470_s21 = int_to_ptr.hbm [resolvable:$true] %s469_s21 }
 0x132   : > { %v683_v61 = vld [vmem:[%s990_s6] ss:$0 sm:$0xff]  ;;  %s455_s24 = scalar_lea.sflag [#allocation8], %s995_s22  ;;  %s744_s9 = sshra.s32 %s470_s21, 4  ;;  %s745_s9 = int_to_ptr.hbm [resolvable:$true] %s744_s9 }
 0x133   : > { %400 = vadd.xlane.f32.xlu0 %v398_v33  ;;  %s746_s0 = scalar_lea.hbm %s745_s9, 16  ;;  %s750_s23 = scalar_lea.hbm %s991_s7, 32 }
 0x134   : > { %p747_p1 = scmp.ne.s32.totalorder %s745_s9, %s746_s0  ;;  %p751_p4 = scmp.lt.s32.totalorder %s745_s9, %s991_s7 }
 0x135   : > { %p752_p7 = scmp.lt.s32.totalorder %s750_s23, %s746_s0 }
 0x136   : > { %p748_p2 = pnand %p747_p1, %p899_p5 }
 0x137   : > { %p753_p8 = por %p752_p7, %p751_p4 }
 0x138   : > { %p749_p3 = pneg %p748_p2 }
 0x13a   : > { %p754_p9 = pnand %p753_p8, %p749_p3 }
 0x13b   : > { %402 = vadd.xlane.f32.xlu0 %v399_v35 }
 0x1a6   : > { %v401_v36 = vpop.xlane.xlu0 %400 }
 0x1a7   : > { %v404_v37 = vmul.f32 0.0078125, %v401_v36 }
 0x1a9   : > { %v406_v38 = vsub.f32 %v398_v33, %v404_v37 }
 0x1ab   : > { %v408_v39 = vmul.f32 %v406_v38, %v406_v38 }
 0x1ad   : > { %410 = vadd.xlane.f32.xlu1 %v408_v39 }
 0x1ae   : > { %v403_v40 = vpop.xlane.xlu0 %402 }
 0x1af   : > { %v405_v41 = vmul.f32 0.0078125, %v403_v40 }
 0x1b1   : > { %v407_v42 = vsub.f32 %v399_v35, %v405_v41 }
 0x1b3   : > { %v409_v43 = vmul.f32 %v407_v42, %v407_v42 }
 0x1b5   : > { %412 = vadd.xlane.f32.xlu1 %v409_v43 }
 0x220   : > { %v411_v44 = vpop.xlane.xlu1 %410 }
 0x221   : > { %v414_v45 = vmul.f32 0.0078125, %v411_v44 }
 0x223   : > { %v416_v46 = vadd.f32 1e-12, %v414_v45 }
 0x225   : > { %684 = vrsqrt.f32 %v416_v46  ;;  %vm424_vm6 = vweird.f32 %v416_v46 }
 0x228   : > { %v413_v47 = vpop.xlane.xlu1 %412 }
 0x229   : > { %v415_v48 = vmul.f32 0.0078125, %v413_v47 }
 0x22b   : > { %v685_v49 = vpop.eup %684  ;;  %v417_v50 = vadd.f32 1e-12, %v415_v48 }
 0x22c   : > { %v419_v51 = vmul.f32 %v685_v49, %v416_v46  ;;  %vm425_vm5 = vweird.f32 %v685_v49 }
 0x22d   : > { %686 = vrsqrt.f32 %v417_v50  ;;  %vm426_vm7 = vmor %vm424_vm6, %vm425_vm5  ;;  %vm434_vm9 = vweird.f32 %v417_v50 }
 0x22e   : > { %v420_v52 = vmul.f32 %v685_v49, %v419_v51 }
 0x230   : > { %v421_v53 = vmul.f32 0.5, %v420_v52 }
 0x232   : > { %v422_v54 = vsub.f32 1.5, %v421_v53 }
 0x233   : > { %v687_v55 = vpop.eup %686 }
 0x234   : > { %v423_v56 = vmul.f32 %v685_v49, %v422_v54  ;;  %v429_v57 = vmul.f32 %v687_v55, %v417_v50  ;;  %vm435_vm8 = vweird.f32 %v687_v55 }
 0x235   : > { %vm436_vm10 = vmor %vm434_vm9, %vm435_vm8 }
 0x236   : > { %v427_v59 = vsel %vm426_vm7, %v685_v49, %v423_v56  ;;  %v430_v60 = vmul.f32 %v687_v55, %v429_v57 }
 0x237   : > { %v438_v62 = vmul.f32 %v427_v59, %v406_v38 }
 0x238   : > { %v431_v63 = vmul.f32 0.5, %v430_v60 }
 0x239   : > { %v444_v0 = vmul.f32 %v682_v58, %v438_v62 }
 0x23a   : > { %v432_v1 = vsub.f32 1.5, %v431_v63 }
 0x23b   : > { %v450_v2 = vadd.f32 %v683_v61, %v444_v0 }
 0x23c   : > { %v433_v3 = vmul.f32 %v687_v55, %v432_v1 }
 0x23d   : > { %452 = vst [vmem:[%s932_s19] sm:$0xff] %v450_v2 }
 0x23e   : > { %v437_v4 = vsel %vm436_vm10, %v687_v55, %v433_v3 }
 0x23f   : > { %v439_v5 = vmul.f32 %v437_v4, %v407_v42 }
 0x241   : > { %v445_v6 = vmul.f32 %v682_v58, %v439_v5 }
 0x243   : > { %v451_v7 = vadd.f32 %v683_v61, %v445_v6 }
 0x245   : > { %453 = vst [vmem:[%s932_s19 + $0x8] sm:$0xff] %v451_v7 }
 0x246   : > { %757 = shalt.err (!%p754_p9)
}
 0x247   : > { %s816_s19 = smov 128   ;;  %s817_s12 = smov 8  }
 0x248   : > { %619 = dma.vmem_to_hbm [thread:$0]  (%p899_p5), %s468_s20, 256, %s470_s21, %s455_s24, %s816_s19, %s816_s19, %s817_s12  }
 0x249 PF: > { %p631_p10 = scmp.ge.s32.totalorder %s804_s8, 2  ;;  %s484_s16 = sand.u32 1, %s792_s28  }
 0x24a   : > { %s485_s17 = scalar_lea.sflag [#allocation8], %s484_s16 }
 0x24b   : > { %p626_p11 = pnand %p631_p10, %p903_p6 }
 0x24d   : > { %p627_p12 = pneg %p626_p11 }
 0x24f   : > { %787 = dma.done.wait (%p627_p12), %s485_s17, 256  }
 0x250   : > { %789 = vsyncadd (%p627_p12), %s485_s17, 4294967040  ;;  %p26_p13 = scmp.ge.s32.totalorder %s886_s10, 4   ;;  %s996_s28 = smov %s796_s29 }
 0x251   : > { %s997_s29 = smov %s800_s30  ;;  %s998_s30 = smov %s897_s13 }
 0x252   : > { %s999_s8 = smov %s886_s10  ;;  %28 = sbr.rel (!%p26_p13) target bundleno = 10 (0xa), region = 138 }
 0x257   :  { %491 = vsyncpa [#allocation7], 1 }
 0x258   :  { %493 = vsyncpa [#allocation7 + $0x1], 1 }
 0x259   :  { %494 = vsyncpa [#allocation8], 1 }
 0x25a   :  { %496 = vsyncpa [#allocation8 + $0x1], 1 }
 0x25b   :  { %497 = vsyncmov [#allocation3] }
 0x25e   :  { %s498_s8 = vpop.sfrf %497 }
 0x25f   :  { %p603_p5 = scmp.ne.s32.totalorder %s498_s8, 0 }
 0x261   :  { %502 = shalt.err (%p603_p5)  }
 0x262   :  { %504 = vsyncmov [#allocation3 + $0x1] }
 0x265   :  { %s505_s14 = vpop.sfrf %504 }
 0x266   :  { %p604_p6 = scmp.ne.s32.totalorder %s505_s14, 0 }
 0x268   :  { %509 = shalt.err (%p604_p6)  }

</bundles_post_ra>
